<compile_context>
chip_gen: v7x
topology: tpu7x:2x2x1
jax: 0.10.0
libtpu: 0.0.40
codegen_flags: <defaults>
</compile_context>

<pallas_src>
import functools
import math

import jax
import jax.numpy as jnp
from jax.experimental import pallas as pl
from jax.experimental.pallas import tpu as pltpu

_HALF_LOG_2PI = 0.5 * math.log(2.0 * math.pi)


def _round_up(x, m):
    return ((x + m - 1) // m) * m


def _pick_tile(dim, max_tile, align):
    """Balanced tile size <= max_tile (multiple of align) with minimal padding."""
    max_tile = max(align, (max_tile // align) * align)
    padded = _round_up(dim, align)
    if padded <= max_tile:
        return padded
    n_tiles = -(-dim // max_tile)                       # ceil
    return _round_up(-(-dim // n_tiles), align)         # <= max_tile by construction


# --------------------------------------------------------------------------
# Prologue: sample W once (bf16 out for the MXU) + lane-dense logpdf partials.
# --------------------------------------------------------------------------
def _sample_weights_kernel(wmu_ref, wls_ref, epsw_ref,
                           w_ref, prior_ref, post_ref,
                           *, prior_mu, inv_prior_s):
    eps = epsw_ref[...]
    w = wmu_ref[...] + eps * jnp.exp(wls_ref[...])        # f32 sampling math
    w_ref[...] = w.astype(w_ref.dtype)                    # bf16 stream for matmul

    # Per-tile partial sums (reduced in the wrapper; more accurate and cheaper
    # than a serial SMEM scalar accumulated inside the matmul loop):
    #   prior:     -0.5 * sum(((w - prior_mu) / prior_s)^2)
    #   posterior: -0.5 * sum(eps^2)   ((w - w_mu)/exp(w_log_s) == eps exactly)
    if prior_mu == 0.0:                                   # trace-time specialization
        z = w * inv_prior_s
    else:
        z = (w - prior_mu) * inv_prior_s
    prior_part = -0.5 * jnp.sum(z * z)
    post_part = -0.5 * jnp.sum(eps * eps)

    sub = jax.lax.broadcasted_iota(jnp.int32, (8, 128), 0)
    lane = jax.lax.broadcasted_iota(jnp.int32, (8, 128), 1)
    head = (sub == 0) & (lane == 0)
    prior_ref[...] = jnp.where(head, prior_part, 0.0)
    post_ref[...] = jnp.where(head, post_part, 0.0)


# --------------------------------------------------------------------------
# Main kernel: bf16 MXU matmul with f32 accumulator + bias add at finalize.
# --------------------------------------------------------------------------
def _matmul_bias_kernel(x_ref, w_ref, b_ref, out_ref, acc_ref):
    k = pl.program_id(2)

    @pl.when(k == 0)
    def _():
        acc_ref[...] = jnp.zeros_like(acc_ref)

    acc_ref[...] += jnp.dot(x_ref[...], w_ref[...],
                            preferred_element_type=jnp.float32)

    @pl.when(k == pl.num_programs(2) - 1)
    def _():
        out_ref[...] = (acc_ref[...] + b_ref[...]).astype(out_ref.dtype)


def bnn_layer_forward(x, w_mu, w_log_s, eps_w, b_mu, b_log_s, eps_b,
                      *, prior_mu=0.0, prior_s=0.01):
    """Equivalent of BNNLayer.forward(X_ND, predict=False, num_preds=1).

    Returns (output (N, O) f32, log_prior scalar, log_post_est scalar).
    """
    f32, bf16 = jnp.float32, jnp.bfloat16
    x = x.astype(f32)
    w_mu = w_mu.astype(f32)
    w_log_s = w_log_s.astype(f32)
    eps_w = eps_w.astype(f32)
    b_mu = jnp.reshape(b_mu, (-1,)).astype(f32)
    b_log_s = jnp.reshape(b_log_s, (-1,)).astype(f32)
    eps_b = jnp.reshape(eps_b, (-1,)).astype(f32)

    n, d = x.shape
    d2, o = w_mu.shape
    assert d == d2

    # Tiles: lane-dense (multiples of 128) on last dims, bf16-friendly sublanes.
    tm = _pick_tile(n, 512, 16)
    tn = _pick_tile(o, 512, 128)
    tk = _pick_tile(d, 1024, 128)
    n_pad = _round_up(n, tm)
    o_pad = _round_up(o, tn)
    d_pad = _round_up(d, tk)

    # ---- prologue: sample W (one pass over the 3 weight streams) ----
    # Zero-padding keeps the matmul's K-padding exactly zero; the padded
    # elements' prior contribution is removed analytically below.
    wmu_p = jnp.pad(w_mu, ((0, d_pad - d), (0, o_pad - o)))
    wls_p = jnp.pad(w_log_s, ((0, d_pad - d), (0, o_pad - o)))
    epsw_p = jnp.pad(eps_w, ((0, d_pad - d), (0, o_pad - o)))

    gd, go = d_pad // tk, o_pad // tn
    sample = functools.partial(_sample_weights_kernel,
                               prior_mu=float(prior_mu),
                               inv_prior_s=1.0 / float(prior_s))
    w_bf, prior_parts, post_parts = pl.pallas_call(
        sample,
        out_shape=(
            jax.ShapeDtypeStruct((d_pad, o_pad), bf16),
            jax.ShapeDtypeStruct((gd * 8, go * 128), f32),
            jax.ShapeDtypeStruct((gd * 8, go * 128), f32),
        ),
        grid=(gd, go),
        in_specs=[
            pl.BlockSpec((tk, tn), lambda i, j: (i, j)),
            pl.BlockSpec((tk, tn), lambda i, j: (i, j)),
            pl.BlockSpec((tk, tn), lambda i, j: (i, j)),
        ],
        out_specs=(
            pl.BlockSpec((tk, tn), lambda i, j: (i, j)),
            pl.BlockSpec((8, 128), lambda i, j: (i, j)),
            pl.BlockSpec((8, 128), lambda i, j: (i, j)),
        ),
        compiler_params=pltpu.CompilerParams(
            dimension_semantics=("parallel", "parallel"),
            vmem_limit_bytes=32 * 1024 * 1024),   # 3 f32 input streams; > v5e 16MiB default
    )(wmu_p, wls_p, epsw_p)

    # ---- bias (O elements): sample + logpdf directly in the wrapper ----
    b = b_mu + eps_b * jnp.exp(b_log_s)
    zb = (b - prior_mu) / prior_s
    prior_b = -0.5 * jnp.sum(zb * zb)
    post_b = -0.5 * jnp.sum(eps_b * eps_b)
    b_p = jnp.pad(b.reshape(1, o), ((0, 0), (0, o_pad - o)))

    # ---- main matmul: bf16 operands, f32 accumulation ----
    xp = jnp.pad(x.astype(bf16), ((0, n_pad - n), (0, d_pad - d)))
    out_p = pl.pallas_call(
        _matmul_bias_kernel,
        out_shape=jax.ShapeDtypeStruct((n_pad, o_pad), f32),
        grid=(n_pad // tm, o_pad // tn, d_pad // tk),
        in_specs=[
            pl.BlockSpec((tm, tk), lambda i, j, k: (i, k)),   # X (bf16)
            pl.BlockSpec((tk, tn), lambda i, j, k: (k, j)),   # W (bf16, pre-sampled)
            pl.BlockSpec((1, tn), lambda i, j, k: (0, j)),    # bias (f32)
        ],
        out_specs=pl.BlockSpec((tm, tn), lambda i, j, k: (i, j)),
        scratch_shapes=[pltpu.VMEM((tm, tn), f32)],
        compiler_params=pltpu.CompilerParams(
            dimension_semantics=("parallel", "parallel", "arbitrary")),
    )(xp, w_bf, b_p)
    out = out_p[:n, :o]

    # ---- assemble scalars: hoisted -0.5*log(2*pi) per real element and the
    # analytic removal of the zero-padded W elements' prior contribution
    # (each padded w==0 contributed -0.5*(prior_mu/prior_s)^2). ----
    n_real = d * o + o
    n_pad_w = d_pad * o_pad - d * o
    pad_prior_fix = 0.5 * (float(prior_mu) / float(prior_s)) ** 2
    log_prior = (jnp.sum(prior_parts) + prior_b
                 + n_pad_w * pad_prior_fix - n_real * _HALF_LOG_2PI)
    log_post = jnp.sum(post_parts) + post_b - n_real * _HALF_LOG_2PI
    return out, log_prior, log_post


# --------------------------------------------------------------------------
# Pure-JAX reference (original, unsimplified formulation).
# --------------------------------------------------------------------------
def _gauss_logpdf(x, mu, s):
    z = (x - mu) / s
    return -0.5 * z * z - _HALF_LOG_2PI


def reference_forward(x, w_mu, w_log_s, eps_w, b_mu, b_log_s, eps_b,
                      *, prior_mu=0.0, prior_s=0.01):
    w = w_mu + eps_w * jnp.exp(w_log_s)
    b = b_mu + eps_b * jnp.exp(b_log_s)
    out = jnp.dot(x, w, precision=jax.lax.Precision.HIGHEST) + b
    log_prior = (jnp.sum(_gauss_logpdf(w, prior_mu, prior_s))
                 + jnp.sum(_gauss_logpdf(b, prior_mu, prior_s)))
    log_post = (jnp.sum(_gauss_logpdf(w, w_mu, jnp.exp(w_log_s)))
                + jnp.sum(_gauss_logpdf(b, b_mu, jnp.exp(b_log_s))))
    return out, log_prior, log_post


if __name__ == "__main__":
    def make_inputs(key, n, d, o):
        ks = jax.random.split(key, 7)
        w_mu = 0.1 * jax.random.normal(ks[0], (d, o), dtype=jnp.float32)
        w_log_s = 0.1 * jax.random.normal(ks[1], (d, o), dtype=jnp.float32)
        b_mu = 0.1 * jax.random.normal(ks[2], (o,), dtype=jnp.float32)
        b_log_s = 0.1 * jax.random.normal(ks[3], (o,), dtype=jnp.float32)
        eps_w = jax.random.normal(ks[4], (d, o), dtype=jnp.float32)
        eps_b = jax.random.normal(ks[5], (o,), dtype=jnp.float32)
        x = jax.random.normal(ks[6], (n, d), dtype=jnp.float32)
        return x, w_mu, w_log_s, eps_w, b_mu, b_log_s, eps_b

    key = jax.random.PRNGKey(0)
    k1, k2 = jax.random.split(key)

    # --- Case 1: module-default shapes (input_dim=30, output_dim=2), batch 8 ---
    args1 = make_inputs(k1, 8, 30, 2)
    out1, lp1, lq1 = bnn_layer_forward(*args1, prior_mu=0.0, prior_s=0.01)
    jax.block_until_ready((out1, lp1, lq1))
    r_out1, r_lp1, r_lq1 = reference_forward(*args1, prior_mu=0.0, prior_s=0.01)
    assert jnp.allclose(out1, r_out1, rtol=2e-2, atol=0.2), "case1 output mismatch"
    assert jnp.allclose(lp1, r_lp1, rtol=1e-4, atol=1.0), "case1 log_prior mismatch"
    assert jnp.allclose(lq1, r_lq1, rtol=1e-4, atol=1.0), "case1 log_post mismatch"

    # --- Case 2: multi-tile grid (K accumulation, padding corrections,
    #     nonzero prior_mu, both parallel axes usable on megacore) ---
    args2 = make_inputs(k2, 300, 1100, 300)
    out2, lp2, lq2 = bnn_layer_forward(*args2, prior_mu=0.05, prior_s=0.1)
    jax.block_until_ready((out2, lp2, lq2))
    r_out2, r_lp2, r_lq2 = reference_forward(*args2, prior_mu=0.05, prior_s=0.1)
    # bf16-MXU operand rounding: abs error ~ 0.004*sqrt(D)*|term| (<~0.5 here).
    assert jnp.allclose(out2, r_out2, rtol=2e-2, atol=1.0), "case2 output mismatch"
    assert jnp.allclose(lp2, r_lp2, rtol=5e-4, atol=5.0), "case2 log_prior mismatch"
    assert jnp.allclose(lq2, r_lq2, rtol=5e-4, atol=5.0), "case2 log_post mismatch"

    print("KERNEL_OK")
</pallas_src>

<mosaic_0001>
module attributes {stable_mosaic.version = 11 : i64} {
  func.func @_sample_weights_kernel(%arg0: i32, %arg1: i32, %arg2: memref<128x128xf32, #tpu.memory_space<vmem>>, %arg3: memref<128x128xf32, #tpu.memory_space<vmem>>, %arg4: memref<128x128xf32, #tpu.memory_space<vmem>>, %arg5: memref<128x128xbf16, #tpu.memory_space<vmem>>, %arg6: memref<8x128xf32, #tpu.memory_space<vmem>>, %arg7: memref<8x128xf32, #tpu.memory_space<vmem>>) attributes {dimension_semantics = [#tpu.dimension_semantics<parallel>, #tpu.dimension_semantics<parallel>], iteration_bounds = array<i64: 1, 1>, scalar_prefetch = 0 : i64, scratch_operands = 0 : i64, tpu.core_type = #tpu.core_type<tc>, window_params = [{transform_indices = @transform_0, window_bounds = array<i64: 128, 128>}, {transform_indices = @transform_1, window_bounds = array<i64: 128, 128>}, {transform_indices = @transform_2, window_bounds = array<i64: 128, 128>}, {transform_indices = @transform_3, window_bounds = array<i64: 128, 128>}, {transform_indices = @transform_4, window_bounds = array<i64: 8, 128>}, {transform_indices = @transform_5, window_bounds = array<i64: 8, 128>}]} {
    %c0 = arith.constant 0 : index
    %c0_0 = arith.constant 0 : index
    %0 = vector.load %arg4[%c0, %c0_0] : memref<128x128xf32, #tpu.memory_space<vmem>>, vector<128x128xf32>
    %c0_1 = arith.constant 0 : index
    %c0_2 = arith.constant 0 : index
    %1 = vector.load %arg2[%c0_1, %c0_2] : memref<128x128xf32, #tpu.memory_space<vmem>>, vector<128x128xf32>
    %c0_3 = arith.constant 0 : index
    %c0_4 = arith.constant 0 : index
    %2 = vector.load %arg3[%c0_3, %c0_4] : memref<128x128xf32, #tpu.memory_space<vmem>>, vector<128x128xf32>
    %3 = math.exp %2 : vector<128x128xf32>
    %4 = arith.mulf %0, %3 : vector<128x128xf32>
    %5 = arith.addf %1, %4 : vector<128x128xf32>
    %6 = arith.truncf %5 : vector<128x128xf32> to vector<128x128xbf16>
    %c0_5 = arith.constant 0 : index
    %c0_6 = arith.constant 0 : index
    %7 = vector.load %arg5[%c0_5, %c0_6] : memref<128x128xbf16, #tpu.memory_space<vmem>>, vector<128x128xbf16>
    tpu.vector_store %arg5[%c0_5, %c0_6], %6 {strides = array<i32>} : memref<128x128xbf16, #tpu.memory_space<vmem>>, vector<128x128xbf16>,
    %cst = arith.constant 1.000000e+02 : f32
    %8 = vector.broadcast %cst : f32 to vector<128x128xf32>
    %9 = arith.mulf %5, %8 : vector<128x128xf32>
    %10 = arith.mulf %9, %9 : vector<128x128xf32>
    %11 = vector.shape_cast %10 : vector<128x128xf32> to vector<1x128x128xf32>
    %cst_7 = arith.constant dense<0.000000e+00> : vector<1xf32>
    %12 = vector.multi_reduction <add>, %11, %cst_7 [1, 2] : vector<1x128x128xf32> to vector<1xf32>
    %13 = vector.shape_cast %12 : vector<1xf32> to vector<1x1x1xf32>
    %14 = vector.extract %13[0, 0, 0] : f32 from vector<1x1x1xf32>
    %cst_8 = arith.constant -5.000000e-01 : f32
    %15 = arith.mulf %cst_8, %14 : f32
    %16 = arith.mulf %0, %0 : vector<128x128xf32>
    %17 = vector.shape_cast %16 : vector<128x128xf32> to vector<1x128x128xf32>
    %cst_9 = arith.constant dense<0.000000e+00> : vector<1xf32>
    %18 = vector.multi_reduction <add>, %17, %cst_9 [1, 2] : vector<1x128x128xf32> to vector<1xf32>
    %19 = vector.shape_cast %18 : vector<1xf32> to vector<1x1x1xf32>
    %20 = vector.extract %19[0, 0, 0] : f32 from vector<1x1x1xf32>
    %cst_10 = arith.constant -5.000000e-01 : f32
    %21 = arith.mulf %cst_10, %20 : f32
    %22 = tpu.iota {dimensions = array<i32: 0>} : vector<8x128xi32>
    %23 = tpu.iota {dimensions = array<i32: 1>} : vector<8x128xi32>
    %c0_i32 = arith.constant 0 : i32
    %24 = vector.broadcast %c0_i32 : i32 to vector<8x128xi32>
    %25 = arith.cmpi eq, %22, %24 : vector<8x128xi32>
    %c0_i32_11 = arith.constant 0 : i32
    %26 = vector.broadcast %c0_i32_11 : i32 to vector<8x128xi32>
    %27 = arith.cmpi eq, %23, %26 : vector<8x128xi32>
    %28 = arith.andi %25, %27 : vector<8x128xi1>
    %cst_12 = arith.constant 0.000000e+00 : f32
    %29 = vector.broadcast %15 : f32 to vector<8x128xf32>
    %30 = vector.broadcast %cst_12 : f32 to vector<8x128xf32>
    %31 = arith.select %28, %29, %30 : vector<8x128xi1>, vector<8x128xf32>
    %c0_13 = arith.constant 0 : index
    %c0_14 = arith.constant 0 : index
    %32 = vector.load %arg6[%c0_13, %c0_14] : memref<8x128xf32, #tpu.memory_space<vmem>>, vector<8x128xf32>
    tpu.vector_store %arg6[%c0_13, %c0_14], %31 {strides = array<i32>} : memref<8x128xf32, #tpu.memory_space<vmem>>, vector<8x128xf32>,
    %cst_15 = arith.constant 0.000000e+00 : f32
    %33 = vector.broadcast %21 : f32 to vector<8x128xf32>
    %34 = vector.broadcast %cst_15 : f32 to vector<8x128xf32>
    %35 = arith.select %28, %33, %34 : vector<8x128xi1>, vector<8x128xf32>
    %c0_16 = arith.constant 0 : index
    %c0_17 = arith.constant 0 : index
    %36 = vector.load %arg7[%c0_16, %c0_17] : memref<8x128xf32, #tpu.memory_space<vmem>>, vector<8x128xf32>
    tpu.vector_store %arg7[%c0_16, %c0_17], %35 {strides = array<i32>} : memref<8x128xf32, #tpu.memory_space<vmem>>, vector<8x128xf32>,
    return
  }
  func.func @transform_0(%arg0: i32, %arg1: i32) -> (i32, i32) {
    %c0_i32 = arith.constant 0 : i32
    return %arg0, %arg1 : i32, i32
  }
  func.func @transform_1(%arg0: i32, %arg1: i32) -> (i32, i32) {
    %c0_i32 = arith.constant 0 : i32
    return %arg0, %arg1 : i32, i32
  }
  func.func @transform_2(%arg0: i32, %arg1: i32) -> (i32, i32) {
    %c0_i32 = arith.constant 0 : i32
    return %arg0, %arg1 : i32, i32
  }
  func.func @transform_3(%arg0: i32, %arg1: i32) -> (i32, i32) {
    %c0_i32 = arith.constant 0 : i32
    return %arg0, %arg1 : i32, i32
  }
  func.func @transform_4(%arg0: i32, %arg1: i32) -> (i32, i32) {
    %c0_i32 = arith.constant 0 : i32
    return %arg0, %arg1 : i32, i32
  }
  func.func @transform_5(%arg0: i32, %arg1: i32) -> (i32, i32) {
    %c0_i32 = arith.constant 0 : i32
    return %arg0, %arg1 : i32, i32
  }
}

</mosaic_0001>

<bundles_post_ra>
// kernel: tpu_custom_call.1
= control target key start
LH: loop header
LB: loop body
LE: loop exit
PB: predicated region body
PF: predicated region fallthrough
CT: control target
= control target key end

     0   :  { %11 = vsyncpa [#allocation3], 0  ;;  %s866_s0 = inlined_call_operand.hbm [shape: f32[128,128], index: 0, kind: input, shape index: {}]   ;;  %s867_s1 = inlined_call_operand.hbm [shape: f32[128,128], index: 1, kind: input, shape index: {}]   ;;  %s868_s2 = inlined_call_operand.hbm [shape: f32[128,128], index: 2, kind: input, shape index: {}]   ;;  %s869_s3 = inlined_call_operand.hbm [shape: bf16[128,128], index: 3, kind: output, shape index: {0}]   ;;  %s870_s4 = inlined_call_operand.hbm [shape: f32[8,128], index: 4, kind: output, shape index: {1}]   ;;  %s871_s5 = inlined_call_operand.hbm [shape: f32[8,128], index: 5, kind: output, shape index: {2}]  }
   0x1   :  { %12 = vsyncpa [#allocation6], 0 }
   0x2   :  { %13 = vsyncpa [#allocation4], 0 }
   0x3   :  { %14 = vsyncpa [#allocation10], 0  ;;  %s673_s18 = smov [#allocation5]   ;;  %s674_s20 = smov [#allocation2]  }
   0x4   :  { %s32_s19 = sshll.u32 %s673_s18, 4  ;;  %s20_s21 = sshll.u32 %s674_s20, 4  ;;  %s33_s19 = int_to_ptr.vmem [resolvable:$true] %s32_s19  ;;  %s713_s21 = int_to_ptr.vmem [resolvable:$true] %s20_s21 }
   0x5   :  { %s533_s24 = scalar_lea.hbm %s867_s1, 2048 }
   0x6   :  { %p534_p0 = scmp.ne.s32.totalorder %s867_s1, %s533_s24  ;;  %p537_p1 = scmp.lt.u32.totalorder %s533_s24, %s867_s1 }
   0x8   :  { %p539_p2 = pnand %p537_p1, %p534_p0 }
   0xa   :  { %542 = shalt.err (!%p539_p2)
}
   0xb   :  { %s543_s29 = scalar_lea.vmem %s33_s19, 2048  ;;  %p548_p4 = scmp.lt.s32.totalorder %s33_s19, %s33_s19 }
   0xc   :  { %p544_p3 = scmp.ne.s32.totalorder %s33_s19, %s543_s29  ;;  %p549_p5 = scmp.lt.s32.totalorder %s543_s29, %s543_s29 }
   0xe   :  { %p550_p6 = por %p549_p5, %p548_p4 }
  0x10   :  { %p551_p7 = pnand %p550_p6, %p544_p3 }
  0x12   :  { %554 = shalt.err (!%p551_p7)
}
  0x13   :  { %s675_s30 = smov 128   ;;  %s676_s6 = smov 8  }
  0x14   :  { %38 = dma.hbm_to_vmem [thread:$0]  %s867_s1, 2048, %s33_s19, [#allocation6], %s675_s30, %s675_s30, %s676_s6  }
  0x15   :  { %s555_s11 = scalar_lea.hbm %s866_s0, 2048 }
  0x16   :  { %p556_p8 = scmp.ne.s32.totalorder %s866_s0, %s555_s11  ;;  %p559_p9 = scmp.lt.u32.totalorder %s555_s11, %s866_s0 }
  0x18   :  { %p561_p10 = pnand %p559_p9, %p556_p8 }
  0x1a   :  { %564 = shalt.err (!%p561_p10)
}
  0x1b   :  { %s565_s16 = scalar_lea.vmem %s713_s21, 2048  ;;  %p570_p12 = scmp.lt.s32.totalorder %s713_s21, %s713_s21 }
  0x1c   :  { %p566_p11 = scmp.ne.s32.totalorder %s713_s21, %s565_s16  ;;  %p571_p13 = scmp.lt.s32.totalorder %s565_s16, %s565_s16 }
  0x1e   :  { %p572_p0 = por %p571_p13, %p570_p12 }
  0x20   :  { %p573_p1 = pnand %p572_p0, %p566_p11 }
  0x22   :  { %576 = shalt.err (!%p573_p1)
}
  0x23   :  { %26 = dma.hbm_to_vmem [thread:$0]  %s866_s0, 2048, %s713_s21, [#allocation3], %s675_s30, %s675_s30, %s676_s6  }
  0x24   :  { %s677_s18 = smov [#allocation7]   ;;  %s577_s23 = scalar_lea.hbm %s868_s2, 2048 }
  0x25   :  { %s44_s19 = sshll.u32 %s677_s18, 4  ;;  %p578_p2 = scmp.ne.s32.totalorder %s868_s2, %s577_s23  ;;  %s45_s19 = int_to_ptr.vmem [resolvable:$true] %s44_s19 }
  0x26   :  { %p581_p3 = scmp.lt.u32.totalorder %s577_s23, %s868_s2 }
  0x28   :  { %p583_p4 = pnand %p581_p3, %p578_p2 }
  0x2a   :  { %586 = shalt.err (!%p583_p4)
}
  0x2b   :  { %s587_s28 = scalar_lea.vmem %s45_s19, 2048  ;;  %p592_p6 = scmp.lt.s32.totalorder %s45_s19, %s45_s19 }
  0x2c   :  { %p588_p5 = scmp.ne.s32.totalorder %s45_s19, %s587_s28  ;;  %p593_p7 = scmp.lt.s32.totalorder %s587_s28, %s587_s28 }
  0x2e   :  { %p594_p8 = por %p593_p7, %p592_p6 }
  0x30   :  { %p595_p9 = pnand %p594_p8, %p588_p5 }
  0x32   :  { %598 = shalt.err (!%p595_p9)
}
  0x33   :  { %50 = dma.hbm_to_vmem [thread:$0]  %s868_s2, 2048, %s45_s19, [#allocation6], %s675_s30, %s675_s30, %s676_s6  }
  0x34   :  { %665 = dma.done.wait [#allocation3], 2048  }
  0x35   :  { %666 = vsyncadd [#allocation3], 4294965248 }
  0x36   :  { %667 = dma.done.wait [#allocation6], 4096  }
  0x37   :  { %668 = vsyncadd [#allocation6], 4294963200  ;;  %v92_v0 = vld [vmem:[#allocation5] sm:$0xff]  ;;  %v93_v1 = vld [vmem:[#allocation5 + $0x8] sm:$0xff]  ;;  %s678_s2 = smov [#allocation8]  }
  0x38   :  { %v94_v2 = vld [vmem:[#allocation5 + $0x10] sm:$0xff]  ;;  %v95_v3 = vld [vmem:[#allocation5 + $0x18] sm:$0xff]  ;;  %v108_v4 = vmul.f32 1.442695, %v92_v0  ;;  %v60_v5 = vld [vmem:[#allocation7] sm:$0xff]  ;;  %s368_s29 = sshll.u32 %s678_s2, 4  ;;  %s369_s29 = int_to_ptr.vmem [resolvable:$true] %s368_s29 }
  0x39   :  { %v61_v6 = vld [vmem:[#allocation7 + $0x8] sm:$0xff]  ;;  %v96_v7 = vld [vmem:[#allocation5 + $0x20] sm:$0xff]  ;;  %v110_v8 = vmul.f32 1.442695, %v93_v1  ;;  %v98_v10 = vld [vmem:[#allocation5 + $0x30] sm:$0xff]  ;;  %v309_v15 = vmul.f32 %v60_v5, %v60_v5  ;;  %s599_s30 = scalar_lea.vmem %s369_s29, 1024  ;;  %p604_p11 = scmp.lt.s32.totalorder %s369_s29, %s369_s29 }
  0x3a   :  { %v97_v9 = vld [vmem:[#allocation5 + $0x28] sm:$0xff]  ;;  %v99_v11 = vld [vmem:[#allocation5 + $0x38] sm:$0xff]  ;;  %501 = vpow2.f32 %v108_v4  ;;  %v112_v12 = vmul.f32 1.442695, %v94_v2  ;;  %v100_v13 = vld [vmem:[#allocation5 + $0x40] sm:$0xff]  ;;  %v310_v16 = vmul.f32 %v61_v6, %v61_v6  ;;  %p600_p10 = scmp.ne.s32.totalorder %s369_s29, %s599_s30  ;;  %p605_p12 = scmp.lt.s32.totalorder %s599_s30, %s599_s30 }
  0x3b   :  { %503 = vpow2.f32 %v110_v8  ;;  %v114_v14 = vmul.f32 1.442695, %v95_v3  ;;  %v101_v17 = vld [vmem:[#allocation5 + $0x48] sm:$0xff]  ;;  %v102_v18 = vld [vmem:[#allocation5 + $0x50] sm:$0xff]  ;;  %v116_v19 = vmul.f32 1.442695, %v96_v7 }
  0x3c   :  { %505 = vpow2.f32 %v112_v12  ;;  %v118_v20 = vmul.f32 1.442695, %v97_v9  ;;  %v120_v21 = vmul.f32 1.442695, %v98_v10  ;;  %v122_v22 = vmul.f32 1.442695, %v99_v11  ;;  %p606_p13 = por %p605_p12, %p604_p11 }
  0x3d   :  { %507 = vpow2.f32 %v114_v14  ;;  %v62_v23 = vld [vmem:[#allocation7 + $0x10] sm:$0xff]  ;;  %v103_v24 = vld [vmem:[#allocation5 + $0x58] sm:$0xff]  ;;  %v124_v25 = vmul.f32 1.442695, %v100_v13  ;;  %v104_v26 = vld [vmem:[#allocation5 + $0x60] sm:$0xff]  ;;  %v325_v29 = vadd.f32 %v310_v16, %v309_v15 }
  0x3e   :  { %509 = vpow2.f32 %v116_v19  ;;  %v126_v27 = vmul.f32 1.442695, %v101_v17  ;;  %v311_v28 = vmul.f32 %v62_v23, %v62_v23  ;;  %v105_v30 = vld [vmem:[#allocation5 + $0x68] sm:$0xff]  ;;  %v128_v31 = vmul.f32 1.442695, %v102_v18  ;;  %v106_v32 = vld [vmem:[#allocation5 + $0x70] sm:$0xff]  ;;  %p607_p0 = pnand %p606_p13, %p600_p10 }
  0x3f   :  { %511 = vpow2.f32 %v118_v20  ;;  %v130_v33 = vmul.f32 1.442695, %v103_v24  ;;  %v63_v34 = vld [vmem:[#allocation7 + $0x18] sm:$0xff]  ;;  %v132_v36 = vmul.f32 1.442695, %v104_v26  ;;  %v76_v43 = vld [vmem:[#allocation2] sm:$0xff] }
  0x40   :  { %513 = vpow2.f32 %v120_v21  ;;  %v107_v35 = vld [vmem:[#allocation5 + $0x78] sm:$0xff]  ;;  %v134_v37 = vmul.f32 1.442695, %v105_v30  ;;  %v312_v38 = vmul.f32 %v63_v34, %v63_v34  ;;  %v326_v39 = vadd.f32 %v325_v29, %v311_v28  ;;  %v77_v44 = vld [vmem:[#allocation2 + $0x8] sm:$0xff]  ;;  %v64_v48 = vld [vmem:[#allocation7 + $0x20] sm:$0xff] }
  0x41   :  { %515 = vpow2.f32 %v122_v22  ;;  %v136_v41 = vmul.f32 1.442695, %v106_v32  ;;  %v138_v45 = vmul.f32 1.442695, %v107_v35  ;;  %v65_v51 = vld [vmem:[#allocation7 + $0x28] sm:$0xff]  ;;  %v78_v52 = vld [vmem:[#allocation2 + $0x10] sm:$0xff]  ;;  %v313_v55 = vmul.f32 %v64_v48, %v64_v48 }
  0x42   :  { %517 = vpow2.f32 %v124_v25  ;;  %v79_v53 = vld [vmem:[#allocation2 + $0x18] sm:$0xff]  ;;  %v327_v56 = vadd.f32 %v326_v39, %v312_v38  ;;  %v66_v58 = vld [vmem:[#allocation7 + $0x30] sm:$0xff]  ;;  %v80_v0 = vld [vmem:[#allocation2 + $0x20] sm:$0xff]  ;;  %v314_v14 = vmul.f32 %v65_v51, %v65_v51 }
  0x43   :  { %519 = vpow2.f32 %v126_v27  ;;  %v765_v63 = vld [vmem:[#allocation7 + $0x38] sm:$0xff]  ;;  %v81_v1 = vld [vmem:[#allocation2 + $0x28] sm:$0xff]  ;;  %v767_v4 = vld [vmem:[#allocation7 + $0x40] sm:$0xff]  ;;  %v315_v38 = vmul.f32 %v66_v58, %v66_v58 }
  0x44   :  { %v502_v40 = vpop.eup %501  ;;  %521 = vpow2.f32 %v128_v31  ;;  %v771_v10 = vld [vmem:[#allocation7 + $0x48] sm:$0xff]  ;;  %v82_v11 = vld [vmem:[#allocation2 + $0x30] sm:$0xff]  ;;  %v83_v12 = vld [vmem:[#allocation2 + $0x38] sm:$0xff]  ;;  %v328_v15 = vadd.f32 %v327_v56, %v313_v55 }
  0x45   :  { %v504_v42 = vpop.eup %503  ;;  %523 = vpow2.f32 %v130_v33  ;;  %v140_v46 = vmul.f32 %v502_v40, %v60_v5  ;;  %v773_v17 = vld [vmem:[#allocation7 + $0x50] sm:$0xff]  ;;  %v84_v24 = vld [vmem:[#allocation2 + $0x40] sm:$0xff]  ;;  %v85_v25 = vld [vmem:[#allocation2 + $0x48] sm:$0xff] }
  0x46   :  { %v506_v47 = vpop.eup %505  ;;  %525 = vpow2.f32 %v132_v36  ;;  %v141_v49 = vmul.f32 %v504_v42, %v61_v6  ;;  %v782_v28 = vld [vmem:[#allocation7 + $0x60] sm:$0xff]  ;;  %v86_v35 = vld [vmem:[#allocation2 + $0x50] sm:$0xff]  ;;  %v87_v36 = vld [vmem:[#allocation2 + $0x58] sm:$0xff]  ;;  %v329_v39 = vadd.f32 %v328_v15, %v314_v14 }
  0x47   :  { %v508_v50 = vpop.eup %507  ;;  %527 = vpow2.f32 %v134_v37  ;;  %v142_v54 = vmul.f32 %v506_v47, %v62_v23  ;;  %v156_v60 = vadd.f32 %v140_v46, %v76_v43  ;;  %v779_v23 = vld [vmem:[#allocation7 + $0x58] sm:$0xff] }
  0x48   :  { %v510_v57 = vpop.eup %509  ;;  %529 = vpow2.f32 %v136_v41  ;;  %v143_v59 = vmul.f32 %v508_v50, %v63_v34  ;;  %v157_v61 = vadd.f32 %v141_v49, %v77_v44  ;;  %v788_v34 = vld [vmem:[#allocation7 + $0x68] sm:$0xff]  ;;  %v791_v41 = vld [vmem:[#allocation7 + $0x70] sm:$0xff]  ;;  %v795_v47 = vld [vmem:[#allocation7 + $0x78] sm:$0xff] }
  0x49   :  { %v512_v62 = vpop.eup %511  ;;  %531 = vpow2.f32 %v138_v45  ;;  %v144_v2 = vmul.f32 %v510_v57, %v64_v48  ;;  %v158_v6 = vadd.f32 %v142_v54, %v78_v52  ;;  %v88_v48 = vld [vmem:[#allocation2 + $0x60] sm:$0xff]  ;;  %v89_v49 = vld [vmem:[#allocation2 + $0x68] sm:$0xff] }
  0x4a   :  { %v514_v3 = vpop.eup %513  ;;  %v145_v5 = vmul.f32 %v512_v62, %v65_v51  ;;  %v769_v7 = vadd.f32 %v143_v59, %v79_v53  ;;  %v443_v8 = vpack.c.bf16 %v157_v61, %v156_v60  ;;  %v252_v51 = vmul.f32 100.0, %v156_v60  ;;  %v90_v59 = vld [vmem:[#allocation2 + $0x70] sm:$0xff]  ;;  %v91_v62 = vld [vmem:[#allocation2 + $0x78] sm:$0xff] }
  0x4b   :  { %v516_v9 = vpop.eup %515  ;;  %v146_v13 = vmul.f32 %v514_v3, %v66_v58  ;;  %v160_v19 = vadd.f32 %v144_v2, %v80_v0  ;;  %v253_v52 = vmul.f32 100.0, %v157_v61  ;;  %v316_v2 = vmul.f32 %v765_v63, %v765_v63 }
  0x4c   :  { %v518_v16 = vpop.eup %517  ;;  %v147_v18 = vmul.f32 %v516_v9, %v765_v63  ;;  %v776_v20 = vadd.f32 %v145_v5, %v81_v1  ;;  %v448_v21 = vpack.c.bf16 %v769_v7, %v158_v6  ;;  %444 = vst [vmem:[#allocation8] sm:$0xff] %v443_v8   ;;  %v254_v1 = vmul.f32 100.0, %v158_v6 }
  0x4d   :  { %v520_v22 = vpop.eup %519  ;;  %v148_v26 = vmul.f32 %v518_v16, %v767_v4  ;;  %v162_v30 = vadd.f32 %v146_v13, %v82_v11  ;;  %v330_v3 = vadd.f32 %v329_v39, %v315_v38  ;;  %v255_v9 = vmul.f32 100.0, %v769_v7 }
  0x4e   :  { %v522_v27 = vpop.eup %521  ;;  %v149_v29 = vmul.f32 %v520_v22, %v771_v10  ;;  %v785_v31 = vadd.f32 %v147_v18, %v83_v12  ;;  %480 = vst [vmem:[#allocation8 + $0x8] sm:$0xff] %v448_v21   ;;  %v453_v32 = vpack.c.bf16 %v776_v20, %v160_v19  ;;  %v268_v11 = vmul.f32 %v252_v51, %v252_v51 }
  0x4f   :  { %v524_v33 = vpop.eup %523  ;;  %v150_v37 = vmul.f32 %v522_v27, %v773_v17  ;;  %v164_v43 = vadd.f32 %v148_v26, %v84_v24  ;;  %v269_v12 = vmul.f32 %v253_v52, %v253_v52  ;;  %v256_v16 = vmul.f32 100.0, %v160_v19 }
  0x50   :  { %v526_v40 = vpop.eup %525  ;;  %v151_v42 = vmul.f32 %v524_v33, %v779_v23  ;;  %v165_v44 = vadd.f32 %v149_v29, %v85_v25  ;;  %481 = vst [vmem:[#allocation8 + $0x10] sm:$0xff] %v453_v32   ;;  %v458_v45 = vpack.c.bf16 %v785_v31, %v162_v30  ;;  %v270_v6 = vmul.f32 %v254_v1, %v254_v1 }
  0x51   :  { %v528_v46 = vpop.eup %527  ;;  %v152_v50 = vmul.f32 %v526_v40, %v782_v28  ;;  %v166_v55 = vadd.f32 %v150_v37, %v86_v35  ;;  %v317_v63 = vmul.f32 %v767_v4, %v767_v4  ;;  %v331_v18 = vadd.f32 %v330_v3, %v316_v2 }
  0x52   :  { %v530_v53 = vpop.eup %529  ;;  %v153_v54 = vmul.f32 %v528_v46, %v788_v34  ;;  %v167_v56 = vadd.f32 %v151_v42, %v87_v36  ;;  %482 = vst [vmem:[#allocation8 + $0x18] sm:$0xff] %v458_v45   ;;  %v463_v57 = vpack.c.bf16 %v165_v44, %v164_v43  ;;  %v257_v22 = vmul.f32 100.0, %v776_v20 }
  0x53   :  { %v532_v58 = vpop.eup %531  ;;  %v154_v0 = vmul.f32 %v530_v53, %v791_v41  ;;  %v168_v61 = vadd.f32 %v152_v50, %v88_v48  ;;  %v271_v24 = vmul.f32 %v255_v9, %v255_v9  ;;  %v284_v25 = vadd.f32 %v269_v12, %v268_v11 }
  0x54   :  { %v155_v60 = vmul.f32 %v532_v58, %v795_v47  ;;  %v169_v5 = vadd.f32 %v153_v54, %v89_v49  ;;  %483 = vst [vmem:[#allocation8 + $0x20] sm:$0xff] %v463_v57   ;;  %v468_v8 = vpack.c.bf16 %v167_v56, %v166_v55  ;;  %v318_v7 = vmul.f32 %v771_v10, %v771_v10 }
  0x55   :  { %v170_v13 = vadd.f32 %v154_v0, %v90_v59  ;;  %v258_v26 = vmul.f32 100.0, %v162_v30  ;;  %v272_v27 = vmul.f32 %v256_v16, %v256_v16  ;;  %v285_v29 = vadd.f32 %v284_v25, %v270_v6 }
  0x56   :  { %v171_v14 = vadd.f32 %v155_v60, %v91_v62  ;;  %484 = vst [vmem:[#allocation8 + $0x28] sm:$0xff] %v468_v8   ;;  %v473_v15 = vpack.c.bf16 %v169_v5, %v168_v61  ;;  %v332_v32 = vadd.f32 %v331_v18, %v317_v63  ;;  %v259_v19 = vmul.f32 100.0, %v785_v31 }
  0x57   :  { %v273_v33 = vmul.f32 %v257_v22, %v257_v22  ;;  %v286_v35 = vadd.f32 %v285_v29, %v271_v24  ;;  %v319_v4 = vmul.f32 %v773_v17, %v773_v17  ;;  %v260_v36 = vmul.f32 100.0, %v164_v43 }
  0x58   :  { %485 = vst [vmem:[#allocation8 + $0x30] sm:$0xff] %v473_v15   ;;  %v478_v21 = vpack.c.bf16 %v171_v14, %v170_v13  ;;  %v274_v37 = vmul.f32 %v258_v26, %v258_v26  ;;  %v333_v38 = vadd.f32 %v332_v32, %v318_v7  ;;  %v261_v39 = vmul.f32 100.0, %v165_v44 }
  0x59   :  { %v287_v20 = vadd.f32 %v286_v35, %v272_v27  ;;  %v275_v40 = vmul.f32 %v259_v19, %v259_v19  ;;  %v320_v10 = vmul.f32 %v779_v23, %v779_v23  ;;  %v262_v30 = vmul.f32 100.0, %v166_v55 }
  0x5a   :  { %486 = vst [vmem:[#allocation8 + $0x38] sm:$0xff] %v478_v21   ;;  %v276_v45 = vmul.f32 %v260_v36, %v260_v36  ;;  %v334_v48 = vadd.f32 %v333_v38, %v319_v4  ;;  %v263_v31 = vmul.f32 100.0, %v167_v56  ;;  %v277_v49 = vmul.f32 %v261_v39, %v261_v39 }
  0x5b   :  { %v288_v42 = vadd.f32 %v287_v20, %v273_v33  ;;  %v321_v17 = vmul.f32 %v782_v28, %v782_v28  ;;  %v264_v43 = vmul.f32 100.0, %v168_v61  ;;  %v278_v51 = vmul.f32 %v262_v30, %v262_v30 }
  0x5c   :  { %v335_v53 = vadd.f32 %v334_v48, %v320_v10  ;;  %v265_v44 = vmul.f32 100.0, %v169_v5  ;;  %v279_v54 = vmul.f32 %v263_v31, %v263_v31  ;;  %v322_v23 = vmul.f32 %v788_v34, %v788_v34 }
  0x5d   :  { %v289_v46 = vadd.f32 %v288_v42, %v274_v37  ;;  %v266_v55 = vmul.f32 100.0, %v170_v13  ;;  %v280_v58 = vmul.f32 %v264_v43, %v264_v43  ;;  %v267_v56 = vmul.f32 100.0, %v171_v14 }
  0x5e   :  { %v336_v62 = vadd.f32 %v335_v53, %v321_v17  ;;  %v281_v0 = vmul.f32 %v265_v44, %v265_v44  ;;  %v323_v28 = vmul.f32 %v791_v41, %v791_v41  ;;  %v324_v9 = vmul.f32 %v795_v47, %v795_v47 }
  0x5f   :  { %v290_v50 = vadd.f32 %v289_v46, %v275_v40  ;;  %v282_v2 = vmul.f32 %v266_v55, %v266_v55  ;;  %v283_v61 = vmul.f32 %v267_v56, %v267_v56 }
  0x60   :  { %v337_v60 = vadd.f32 %v336_v62, %v322_v23 }
  0x61   :  { %v291_v52 = vadd.f32 %v290_v50, %v276_v45 }
  0x62   :  { %v338_v34 = vadd.f32 %v337_v60, %v323_v28 }
  0x63   :  { %v292_v57 = vadd.f32 %v291_v52, %v277_v49 }
  0x64   :  { %v339_v12 = vadd.f32 %v338_v34, %v324_v9 }
  0x65   :  { %v293_v59 = vadd.f32 %v292_v57, %v278_v51 }
  0x67   :  { %v294_v1 = vadd.f32 %v293_v59, %v279_v54 }
  0x69   :  { %v295_v3 = vadd.f32 %v294_v1, %v280_v58 }
  0x6b   :  { %v296_v5 = vadd.f32 %v295_v3, %v281_v0 }
  0x6d   :  { %v297_v8 = vadd.f32 %v296_v5, %v282_v2 }
  0x6f   :  { %v298_v11 = vadd.f32 %v297_v8, %v283_v61 }
  0x71   :  { %299 = vadd.xlane.f32.xlu0 %v298_v11 }
  0x75   :  { %340 = vadd.xlane.f32.xlu0 %v339_v12 }
  0x76   :  { %610 = shalt.err (!%p607_p0)
}
  0x77   :  { %s611_s8 = scalar_lea.hbm %s869_s3, 1024 }
  0x78   :  { %p612_p1 = scmp.ne.s32.totalorder %s869_s3, %s611_s8  ;;  %p615_p2 = scmp.lt.u32.totalorder %s611_s8, %s869_s3 }
  0x7a   :  { %p617_p3 = pnand %p615_p2, %p612_p1 }
  0x7c   :  { %620 = shalt.err (!%p617_p3)
}
  0x7d   :  { %s679_s13 = smov 64   ;;  %s680_s14 = smov 4   ;;  %v350_v26 = vlaneseq }
  0x7e   :  { %374 = dma.vmem_to_hbm [thread:$0]  %s369_s29, 1024, %s869_s3, [#allocation4], %s679_s13, %s679_s13, %s680_s14  }
  0x7f   :  { %v351_v27 = vshrl.u32 %v350_v26, 7  ;;  %v353_v29 = vand.u32 127, %v350_v26  ;;  %s681_s1 = smov [#allocation9]   ;;  %s682_s20 = smov [#allocation11]  }
  0x80   :  { %s381_s17 = sshll.u32 %s681_s1, 4  ;;  %s391_s22 = sshll.u32 %s682_s20, 4  ;;  %s382_s17 = int_to_ptr.vmem [resolvable:$true] %s381_s17  ;;  %s392_s22 = int_to_ptr.vmem [resolvable:$true] %s391_s22 }
  0x81   :  { %vm354_vm0 = vcmp.eq.s32.totalorder %v351_v27, 0  ;;  %vm355_vm1 = vcmp.eq.s32.totalorder %v353_v29, 0  ;;  %s621_s24 = scalar_lea.vmem %s382_s17, 128  ;;  %p626_p5 = scmp.lt.s32.totalorder %s382_s17, %s382_s17 }
  0x82   :  { %vm834_vm2 = vmand %vm354_vm0, %vm355_vm1  ;;  %p622_p4 = scmp.ne.s32.totalorder %s382_s17, %s621_s24  ;;  %p627_p6 = scmp.lt.s32.totalorder %s621_s24, %s621_s24 }
  0x84   :  { %p628_p7 = por %p627_p6, %p626_p5 }
  0x86   :  { %p629_p8 = pnand %p628_p7, %p622_p4 }
  0xfe   :  { %v300_v41 = vpop.xlane.xlu0 %299 }
  0xff   :  { %v301_v47 = vrot.slane %v300_v41, 4 }
 0x101   :  { %v302_v13 = vadd.f32 %v301_v47, %v300_v41 }
 0x102   :  { %v341_v14 = vpop.xlane.xlu0 %340 }
 0x103   :  { %v303_v15 = vrot.slane %v302_v13, 2  ;;  %v342_v16 = vrot.slane %v341_v14, 4 }
 0x105   :  { %v343_v6 = vadd.f32 %v342_v16, %v341_v14  ;;  %v304_v63 = vadd.f32 %v303_v15, %v302_v13 }
 0x107   :  { %v344_v18 = vrot.slane %v343_v6, 2  ;;  %v305_v21 = vrot.slane %v304_v63, 1 }
 0x109   :  { %v345_v22 = vadd.f32 %v344_v18, %v343_v6  ;;  %v306_v24 = vadd.f32 %v305_v21, %v304_v63 }
 0x10b   :  { %487 = vpush %v306_v24  ;;  %v346_v25 = vrot.slane %v345_v22, 1 }
 0x10d   :  { %v347_v7 = vadd.f32 %v346_v25, %v345_v22 }
 0x10f   :  { %489 = vpush %v347_v7 }
 0x13c   :  { %s488_s3 = spop %487 }
 0x13d   :  { %s308_s18 = smul.f32 -0.5, %s488_s3 }
 0x13f   :  { %v357_v19 = vstv %s308_s18 }
 0x140   :  { %v358_v33 = vsel %vm834_vm2, %v357_v19, 0.0  ;;  %s490_s19 = spop %489 }
 0x141   :  { %359 = vst [vmem:[#allocation9] sm:$0xff] %v358_v33  ;;  %s349_s23 = smul.f32 -0.5, %s490_s19 }
 0x142   :  { %632 = shalt.err (!%p629_p8)
}
 0x143   :  { %s633_s27 = scalar_lea.hbm %s870_s4, 128 }
 0x144   :  { %p634_p9 = scmp.ne.s32.totalorder %s870_s4, %s633_s27  ;;  %p637_p10 = scmp.lt.u32.totalorder %s633_s27, %s870_s4 }
 0x146   :  { %p639_p11 = pnand %p637_p10, %p634_p9 }
 0x148   :  { %642 = shalt.err (!%p639_p11)
}
 0x149   :  { %384 = dma.vmem_to_hbm [thread:$0]  %s382_s17, 128, %s870_s4, [#allocation10]   ;;  %v360_v35 = vstv %s349_s23 }
 0x14a   :  { %v361_v4 = vsel %vm834_vm2, %v360_v35, 0.0  ;;  %s643_s6 = scalar_lea.vmem %s392_s22, 128  ;;  %p648_p13 = scmp.lt.s32.totalorder %s392_s22, %s392_s22 }
 0x14b   :  { %362 = vst [vmem:[#allocation11] sm:$0xff] %v361_v4  ;;  %p644_p12 = scmp.ne.s32.totalorder %s392_s22, %s643_s6  ;;  %p649_p0 = scmp.lt.s32.totalorder %s643_s6, %s643_s6 }
 0x14d   :  { %p650_p1 = por %p649_p0, %p648_p13 }
 0x14f   :  { %p651_p2 = pnand %p650_p1, %p644_p12 }
 0x151   :  { %654 = shalt.err (!%p651_p2)
}
 0x152   :  { %s655_s9 = scalar_lea.hbm %s871_s5, 128 }
 0x153   :  { %p656_p3 = scmp.ne.s32.totalorder %s871_s5, %s655_s9  ;;  %p659_p4 = scmp.lt.u32.totalorder %s655_s9, %s871_s5 }
 0x155   :  { %p661_p5 = pnand %p659_p4, %p656_p3 }
 0x157   :  { %664 = shalt.err (!%p661_p5)
}
 0x158   :  { %394 = dma.vmem_to_hbm [thread:$0]  %s392_s22, 128, %s871_s5, [#allocation10]  }
 0x159   :  { %669 = dma.done.wait [#allocation4], 1024  }
 0x15a   :  { %670 = vsyncadd [#allocation4], 4294966272 }
 0x15b   :  { %671 = dma.done.wait [#allocation10], 256  }
 0x15c   :  { %672 = vsyncadd [#allocation10], 4294967040 }
 0x15d   :  { %404 = vsyncpa [#allocation3], 1 }
 0x15e   :  { %405 = vsyncpa [#allocation6], 1 }
 0x15f   :  { %406 = vsyncpa [#allocation4], 1 }
 0x160   :  { %407 = vsyncpa [#allocation10], 1 }

</bundles_post_ra>
